<compile_context>
chip_gen: v6e
topology: v6e:2x2x1
jax: 0.10.0
libtpu: 0.0.40
codegen_flags: <defaults>
</compile_context>

<pallas_src>
import jax
import jax.numpy as jnp
from jax.experimental import pallas as pl
from jax.experimental.pallas import tpu as pltpu

_SUBLANE = 8  # f32 sublane granularity


def _round_up(n: int, m: int) -> int:
    return ((n + m - 1) // m) * m


def _vmem_limit_bytes() -> int:
    # ~75% of physical VMEM: ~96 MiB on v5e/v6e (128 MiB), ~48 MiB on v7x (64 MiB).
    try:
        cap = int(pltpu.get_tpu_info().vmem_capacity_bytes)
    except Exception:
        cap = 64 * 1024 * 1024  # conservative default, valid on every generation
    return max(16 * 1024 * 1024, int(cap * 0.75))


def _ffn_resident_kernel(x_ref, w1_ref, b1_ref, w2_ref, b2_ref, o_ref):
    # x_ref: (tm, D) f32 | w1_ref: (D, H) bf16 | b1_ref: (1, H) f32
    # w2_ref: (H, D) bf16 | b2_ref: (1, D) f32 | o_ref: (tm, D)
    xb = x_ref[...].astype(jnp.bfloat16)                       # bf16 into the MXU
    h = jnp.dot(xb, w1_ref[...], preferred_element_type=jnp.float32)
    h = jnp.maximum(h + b1_ref[...], 0.0)                      # bias + ReLU on VPU (f32)
    o = jnp.dot(h.astype(jnp.bfloat16), w2_ref[...],
                preferred_element_type=jnp.float32)
    o_ref[...] = (o + b2_ref[...]).astype(o_ref.dtype)


def _ffn_htiled_kernel(x_ref, w1_ref, b1_ref, w2_ref, b2_ref, o_ref, acc_ref):
    # Streams w1/w2 over H-chunks; f32 accumulator persists across the H axis.
    j = pl.program_id(1)

    @pl.when(j == 0)
    def _():
        acc_ref[...] = jnp.zeros_like(acc_ref)

    xb = x_ref[...].astype(jnp.bfloat16)
    h = jnp.dot(xb, w1_ref[...], preferred_element_type=jnp.float32)
    h = jnp.maximum(h + b1_ref[...], 0.0)       # ReLU is per-H-column -> chunking is exact
    acc_ref[...] += jnp.dot(h.astype(jnp.bfloat16), w2_ref[...],
                            preferred_element_type=jnp.float32)

    @pl.when(j == pl.num_programs(1) - 1)
    def _():
        o_ref[...] = (acc_ref[...] + b2_ref[...]).astype(o_ref.dtype)


def feedforward_forward(x, w1, b1, w2, b2, *, row_tile=512, h_tile=512,
                        force_h_tiled=False):
    """relu(x @ w1 + b1) @ w2 + b2 == nn.Linear -> ReLU -> nn.Linear.

    x: (..., D); w1: (D, H); b1: (H,); w2: (H, D); b2: (D,)
    (weights stored pre-transposed relative to PyTorch's (out, in) layout).
    """
    *lead, D = x.shape
    H = w1.shape[1]
    assert w1.shape == (D, H) and w2.shape == (H, D)
    assert b1.shape == (H,) and b2.shape == (D,)

    x2 = x.reshape(-1, D)
    M = x2.shape[0]

    # Row tile: when M is large, guarantee >= 2 grid steps (256-aligned) so both
    # v7x TensorCores get work; otherwise one tile covering all rows (8-row sublane).
    if M >= 512:
        tm = min(row_tile, _round_up(pl.cdiv(M, 2), 256))
    else:
        tm = _round_up(min(M, row_tile), _SUBLANE)
    n_rows = pl.cdiv(M, tm)  # ragged last block handled by Pallas (no jnp.pad / slice)

    # Weights feed the MXU in bf16 (f32 accumulation); biases stay f32.
    w1b = w1.astype(jnp.bfloat16)
    w2b = w2.astype(jnp.bfloat16)
    b1_2d = b1.reshape(1, H).astype(jnp.float32)
    b2_2d = b2.reshape(1, D).astype(jnp.float32)

    vmem_limit = _vmem_limit_bytes()

    # Estimated VMEM footprint of the weight-resident path (bytes).
    resident_bytes = (
        4 * D * H                 # w1 + w2 in bf16, single-buffered
        + 2 * 2 * tm * D * 4      # x / out tiles (f32), double-buffered
        + tm * H * 6              # hidden in f32 + bf16 copy
        + tm * D * 4              # second-matmul f32 result before cast
    )
    use_h_tiled = force_h_tiled or (
        resident_bytes > int(0.8 * vmem_limit) and H % 128 == 0)

    flops = 4 * M * D * H
    bytes_accessed = (x2.size * x2.dtype.itemsize + M * D * x.dtype.itemsize
                      + 2 * D * H + 2 * H * D + 4 * (H + D))
    cost = pl.CostEstimate(flops=flops, transcendentals=0,
                           bytes_accessed=bytes_accessed)

    if not use_h_tiled:
        out = pl.pallas_call(
            _ffn_resident_kernel,
            out_shape=jax.ShapeDtypeStruct((M, D), x.dtype),
            grid=(n_rows,),
            in_specs=[
                pl.BlockSpec((tm, D), lambda i: (i, 0)),            # x rows, streamed
                pl.BlockSpec((D, H), lambda i: (0, 0),
                             pipeline_mode=pl.Buffered(1)),          # w1 resident
                pl.BlockSpec((1, H), lambda i: (0, 0),
                             pipeline_mode=pl.Buffered(1)),          # b1 resident
                pl.BlockSpec((H, D), lambda i: (0, 0),
                             pipeline_mode=pl.Buffered(1)),          # w2 resident
                pl.BlockSpec((1, D), lambda i: (0, 0),
                             pipeline_mode=pl.Buffered(1)),          # b2 resident
            ],
            out_specs=pl.BlockSpec((tm, D), lambda i: (i, 0)),
            compiler_params=pltpu.CompilerParams(
                dimension_semantics=("parallel",),
                vmem_limit_bytes=vmem_limit),
            cost_estimate=cost,
        )(x2, w1b, b1_2d, w2b, b2_2d)
    else:
        # Streamed / H-tiled fallback: H must split into 128-multiples exactly so
        # no out-of-bounds hidden columns contaminate the accumulation.
        th = max(128, (min(h_tile, H) // 128) * 128)
        while H % th != 0:
            th -= 128
        n_h = H // th
        out = pl.pallas_call(
            _ffn_htiled_kernel,
            out_shape=jax.ShapeDtypeStruct((M, D), x.dtype),
            grid=(n_rows, n_h),
            in_specs=[
                pl.BlockSpec((tm, D), lambda i, j: (i, 0)),          # x rows
                pl.BlockSpec((D, th), lambda i, j: (0, j)),          # w1 H-chunk
                pl.BlockSpec((1, th), lambda i, j: (0, j)),          # b1 H-chunk
                pl.BlockSpec((th, D), lambda i, j: (j, 0)),          # w2 H-chunk
                pl.BlockSpec((1, D), lambda i, j: (0, 0),
                             pipeline_mode=pl.Buffered(1)),          # b2 resident
            ],
            out_specs=pl.BlockSpec((tm, D), lambda i, j: (i, 0)),
            scratch_shapes=[pltpu.VMEM((tm, D), jnp.float32)],
            compiler_params=pltpu.CompilerParams(
                dimension_semantics=("parallel", "arbitrary"),
                vmem_limit_bytes=vmem_limit),
            cost_estimate=cost,
        )(x2, w1b, b1_2d, w2b, b2_2d)

    return out.reshape(*lead, D)


if __name__ == "__main__":
    # Small, lane-friendly shapes: batch=2, seq=8, embed_dim=128, hidden_dim=256.
    B, S, D, H = 2, 8, 128, 256

    key = jax.random.PRNGKey(0)
    kx, kw1, kb1, kw2, kb2 = jax.random.split(key, 5)

    x = jax.random.normal(kx, (B, S, D), dtype=jnp.float32)

    # PyTorch nn.Linear default init: U(-1/sqrt(fan_in), 1/sqrt(fan_in)).
    bound1 = 1.0 / (D ** 0.5)
    bound2 = 1.0 / (H ** 0.5)
    w1 = jax.random.uniform(kw1, (D, H), jnp.float32, -bound1, bound1)
    b1 = jax.random.uniform(kb1, (H,), jnp.float32, -bound1, bound1)
    w2 = jax.random.uniform(kw2, (H, D), jnp.float32, -bound2, bound2)
    b2 = jax.random.uniform(kb2, (D,), jnp.float32, -bound2, bound2)

    # Plain-JAX f32 reference (bf16 MXU inputs -> slightly looser tolerance).
    ref = (jnp.maximum(x.reshape(-1, D) @ w1 + b1, 0.0) @ w2 + b2).reshape(B, S, D)

    out = jax.block_until_ready(feedforward_forward(x, w1, b1, w2, b2))
    assert out.shape == (B, S, D)
    assert jnp.allclose(out, ref, atol=2e-2, rtol=2e-2), "resident path mismatch"

    # Also exercise the H-tiled streaming-weights fallback (used when the resident
    # tile set would not fit VMEM, e.g. large D*H on v7x's 64 MiB per TC).
    out2 = jax.block_until_ready(
        feedforward_forward(x, w1, b1, w2, b2, force_h_tiled=True))
    assert jnp.allclose(out2, ref, atol=2e-2, rtol=2e-2), "H-tiled path mismatch"

    print("KERNEL_OK")
</pallas_src>

<mosaic_0001>
module attributes {stable_mosaic.version = 11 : i64} {
  func.func @_ffn_resident_kernel(%arg0: i32, %arg1: memref<16x128xf32, #tpu.memory_space<vmem>>, %arg2: memref<128x256xbf16, #tpu.memory_space<vmem>>, %arg3: memref<1x256xf32, #tpu.memory_space<vmem>>, %arg4: memref<256x128xbf16, #tpu.memory_space<vmem>>, %arg5: memref<1x128xf32, #tpu.memory_space<vmem>>, %arg6: memref<16x128xf32, #tpu.memory_space<vmem>>) attributes {dimension_semantics = [#tpu.dimension_semantics<parallel>], iteration_bounds = array<i64: 1>, scalar_prefetch = 0 : i64, scratch_operands = 0 : i64, tpu.core_type = #tpu.core_type<tc>, window_params = [{transform_indices = @transform_0, window_bounds = array<i64: 16, 128>}, {pipeline_mode = #tpu.pipeline_mode<synchronous>, transform_indices = @transform_1, window_bounds = array<i64: 128, 256>}, {pipeline_mode = #tpu.pipeline_mode<synchronous>, transform_indices = @transform_2, window_bounds = array<i64: 1, 256>}, {pipeline_mode = #tpu.pipeline_mode<synchronous>, transform_indices = @transform_3, window_bounds = array<i64: 256, 128>}, {pipeline_mode = #tpu.pipeline_mode<synchronous>, transform_indices = @transform_4, window_bounds = array<i64: 1, 128>}, {transform_indices = @transform_5, window_bounds = array<i64: 16, 128>}]} {
    %c0 = arith.constant 0 : index
    %c0_0 = arith.constant 0 : index
    %0 = vector.load %arg1[%c0, %c0_0] : memref<16x128xf32, #tpu.memory_space<vmem>>, vector<16x128xf32>
    %1 = arith.truncf %0 : vector<16x128xf32> to vector<16x128xbf16>
    %c0_1 = arith.constant 0 : index
    %c0_2 = arith.constant 0 : index
    %2 = vector.load %arg2[%c0_1, %c0_2] : memref<128x256xbf16, #tpu.memory_space<vmem>>, vector<128x256xbf16>
    %cst = arith.constant dense<0.000000e+00> : vector<16x256xf32>
    %3 = tpu.matmul %1, %2, %cst {dimension_numbers = #tpu.dot_dimension_numbers<[1], [0], [0], [1], [0, 0, 1, 1], [], []>} : vector<16x128xbf16>, vector<128x256xbf16>, vector<16x256xf32> -> vector<16x256xf32>
    %c0_3 = arith.constant 0 : index
    %c0_4 = arith.constant 0 : index
    %4 = vector.load %arg3[%c0_3, %c0_4] : memref<1x256xf32, #tpu.memory_space<vmem>>, vector<1x256xf32>
    %5 = vector.broadcast %4 : vector<1x256xf32> to vector<16x256xf32>
    %6 = arith.addf %3, %5 : vector<16x256xf32>
    %cst_5 = arith.constant 0.000000e+00 : f32
    %7 = vector.broadcast %cst_5 : f32 to vector<16x256xf32>
    %8 = arith.maximumf %6, %7 : vector<16x256xf32>
    %9 = arith.truncf %8 : vector<16x256xf32> to vector<16x256xbf16>
    %c0_6 = arith.constant 0 : index
    %c0_7 = arith.constant 0 : index
    %10 = vector.load %arg4[%c0_6, %c0_7] : memref<256x128xbf16, #tpu.memory_space<vmem>>, vector<256x128xbf16>
    %cst_8 = arith.constant dense<0.000000e+00> : vector<16x128xf32>
    %11 = tpu.matmul %9, %10, %cst_8 {dimension_numbers = #tpu.dot_dimension_numbers<[1], [0], [0], [1], [0, 0, 1, 1], [], []>} : vector<16x256xbf16>, vector<256x128xbf16>, vector<16x128xf32> -> vector<16x128xf32>
    %c0_9 = arith.constant 0 : index
    %c0_10 = arith.constant 0 : index
    %12 = vector.load %arg5[%c0_9, %c0_10] : memref<1x128xf32, #tpu.memory_space<vmem>>, vector<1x128xf32>
    %13 = vector.broadcast %12 : vector<1x128xf32> to vector<16x128xf32>
    %14 = arith.addf %11, %13 : vector<16x128xf32>
    %c0_11 = arith.constant 0 : index
    %c0_12 = arith.constant 0 : index
    %15 = vector.load %arg6[%c0_11, %c0_12] : memref<16x128xf32, #tpu.memory_space<vmem>>, vector<16x128xf32>
    tpu.vector_store %arg6[%c0_11, %c0_12], %14 {strides = array<i32>} : memref<16x128xf32, #tpu.memory_space<vmem>>, vector<16x128xf32>,
    return
  }
  func.func @transform_0(%arg0: i32) -> (i32, i32) {
    %c0_i32 = arith.constant 0 : i32
    %c0_i32_0 = arith.constant 0 : i32
    return %arg0, %c0_i32 : i32, i32
  }
  func.func @transform_1(%arg0: i32) -> (i32, i32) {
    %c0_i32 = arith.constant 0 : i32
    %c0_i32_0 = arith.constant 0 : i32
    %c0_i32_1 = arith.constant 0 : i32
    return %c0_i32, %c0_i32_0 : i32, i32
  }
  func.func @transform_2(%arg0: i32) -> (i32, i32) {
    %c0_i32 = arith.constant 0 : i32
    %c0_i32_0 = arith.constant 0 : i32
    %c0_i32_1 = arith.constant 0 : i32
    return %c0_i32, %c0_i32_0 : i32, i32
  }
  func.func @transform_3(%arg0: i32) -> (i32, i32) {
    %c0_i32 = arith.constant 0 : i32
    %c0_i32_0 = arith.constant 0 : i32
    %c0_i32_1 = arith.constant 0 : i32
    return %c0_i32, %c0_i32_0 : i32, i32
  }
  func.func @transform_4(%arg0: i32) -> (i32, i32) {
    %c0_i32 = arith.constant 0 : i32
    %c0_i32_0 = arith.constant 0 : i32
    %c0_i32_1 = arith.constant 0 : i32
    return %c0_i32, %c0_i32_0 : i32, i32
  }
  func.func @transform_5(%arg0: i32) -> (i32, i32) {
    %c0_i32 = arith.constant 0 : i32
    %c0_i32_0 = arith.constant 0 : i32
    return %arg0, %c0_i32 : i32, i32
  }
}

</mosaic_0001>

<bundles_post_ra>
// kernel: tpu_custom_call.1
= control target key start
LH: loop header
LB: loop body
LE: loop exit
PB: predicated region body
PF: predicated region fallthrough
CT: control target
= control target key end

     0   :  { %10 = vsyncpa [#allocation3], 0  ;;  %s675_s0 = inlined_call_operand.hbm [shape: f32[16,128], index: 0, kind: input, shape index: {}]   ;;  %s676_s1 = inlined_call_operand.hbm [shape: bf16[128,256], index: 1, kind: input, shape index: {}]   ;;  %s677_s2 = inlined_call_operand.vmem [shape: f32[1,256], index: 2, kind: input, shape index: {}]   ;;  %s678_s3 = inlined_call_operand.hbm [shape: bf16[256,128], index: 3, kind: input, shape index: {}]   ;;  %s679_s4 = inlined_call_operand.vmem [shape: f32[1,128], index: 4, kind: input, shape index: {}]   ;;  %s680_s5 = inlined_call_operand.hbm [shape: f32[16,128], index: 5, kind: output, shape index: {}]  }
   0x1   :  { %11 = vsyncpa [#allocation6], 0 }
   0x2   :  { %12 = vsyncpa [#allocation4], 0  ;;  %s609_s18 = smov [#allocation5]   ;;  %s610_s20 = smov [#allocation2]  }
   0x3   :  { %s30_s19 = sshll.u32 %s609_s18, 4  ;;  %s18_s21 = sshll.u32 %s610_s20, 4  ;;  %s31_s19 = int_to_ptr.vmem [resolvable:$true] %s30_s19  ;;  %s19_s21 = int_to_ptr.vmem [resolvable:$true] %s18_s21 }
   0x4   :  { %s531_s22 = scalar_lea.vmem %s31_s19, 2048  ;;  %p536_p1 = scmp.lt.s32.totalorder %s31_s19, %s31_s19 }
   0x5   :  { %p532_p0 = scmp.ne.s32.totalorder %s31_s19, %s531_s22  ;;  %p537_p2 = scmp.lt.s32.totalorder %s531_s22, %s531_s22 }
   0x7   :  { %p538_p3 = por %p537_p2, %p536_p1 }
   0x9   :  { %p539_p4 = pnand %p538_p3, %p532_p0 }
   0xb   :  { %542 = shalt.err (!%p539_p4)
}
   0xc   :  { %s611_s23 = smov 128   ;;  %s612_s24 = smov 8  }
   0xd   :  { %36 = dma.hbm_to_vmem [thread:$0]  %s676_s1, 2048, %s31_s19, [#allocation6], %s611_s23, %s611_s23, %s612_s24  }
   0xe   :  { %s551_s27 = scalar_lea.vmem %s19_s21, 256  ;;  %p556_p6 = scmp.lt.s32.totalorder %s19_s21, %s19_s21 }
   0xf   :  { %p552_p5 = scmp.ne.s32.totalorder %s19_s21, %s551_s27  ;;  %p557_p7 = scmp.lt.s32.totalorder %s551_s27, %s551_s27 }
  0x11   :  { %p558_p8 = por %p557_p7, %p556_p6 }
  0x13   :  { %p559_p9 = pnand %p558_p8, %p552_p5 }
  0x15   :  { %562 = shalt.err (!%p559_p9)
}
  0x16   :  { %24 = dma.hbm_to_vmem [thread:$0]  %s675_s0, 256, %s19_s21, [#allocation3], %s611_s23, %s611_s23, %s612_s24  }
  0x17   :  { %s613_s30 = smov [#allocation7]  }
  0x18   :  { %s44_s6 = sshll.u32 %s613_s30, 4  ;;  %s45_s6 = int_to_ptr.vmem [resolvable:$true] %s44_s6 }
  0x19   :  { %s571_s7 = scalar_lea.vmem %s45_s6, 2048  ;;  %p576_p11 = scmp.lt.s32.totalorder %s45_s6, %s45_s6 }
  0x1a   :  { %p572_p10 = scmp.ne.s32.totalorder %s45_s6, %s571_s7  ;;  %p577_p12 = scmp.lt.s32.totalorder %s571_s7, %s571_s7 }
  0x1c   :  { %p578_p13 = por %p577_p12, %p576_p11 }
  0x1e   :  { %p579_p0 = pnand %p578_p13, %p572_p10 }
  0x20   :  { %582 = shalt.err (!%p579_p0)
}
  0x21   :  { %s614_s1 = smov 64   ;;  %s615_s8 = smov 4  }
  0x22   :  { %50 = dma.hbm_to_vmem [thread:$0]  %s678_s3, 2048, %s45_s6, [#allocation6], %s614_s1, %s614_s1, %s615_s8  }
  0x23   :  { %603 = dma.done.wait [#allocation3], 256  }
  0x24   :  { %604 = vsyncadd [#allocation3], 4294967040 }
  0x25   :  { %605 = dma.done.wait [#allocation6], 4096  }
  0x26   :  { %606 = vsyncadd [#allocation6], 4294963200  ;;  %v616_v0 = vmov 0   ;;  %v483_v1 = vld [vmem:[#allocation5 + $0x74] ss:$8 sps:$4 sm:$0xff]   ;;  %v511_v16 = vld [vmem:[#allocation7 + $0x68] sm:$0xff]   ;;  %v84_v36 = vlaneseq }
  0x27   :  { %206 = vmatprep.mubr.bf16.mxu0 %v616_v0  ;;  %v485_v2 = vld [vmem:[#allocation5 + $0x70] ss:$8 sps:$4 sm:$0xff]   ;;  %174 = vmatprep.subr.bf16.mxu0 %v483_v1  ;;  %v486_v3 = vld [vmem:[#allocation5 + $0x64] ss:$8 sps:$4 sm:$0xff]   ;;  %v488_v4 = vld [vmem:[#allocation5 + $0x60] ss:$8 sps:$4 sm:$0xff]  }
  0x28   :  { %175 = vmatpush1.bf16.msra.mxu0 %v485_v2  ;;  %v489_v5 = vld [vmem:[#allocation5 + $0x54] ss:$8 sps:$4 sm:$0xff]   ;;  %v491_v6 = vld [vmem:[#allocation5 + $0x50] ss:$8 sps:$4 sm:$0xff]   ;;  %v492_v7 = vld [vmem:[#allocation5 + $0x44] ss:$8 sps:$4 sm:$0xff]  }
  0x29   :  { %176 = vmatprep.subr.bf16.mxu0 %v486_v3  ;;  %v494_v8 = vld [vmem:[#allocation5 + $0x40] ss:$8 sps:$4 sm:$0xff]   ;;  %v495_v9 = vld [vmem:[#allocation5 + $0x34] ss:$8 sps:$4 sm:$0xff]   ;;  %v497_v11 = vld [vmem:[#allocation5 + $0x30] ss:$8 sps:$4 sm:$0xff]  }
  0x2a   :  { %v507_v10 = vld [vmem:[#allocation7 + $0x78] sm:$0xff]   ;;  %v498_v13 = vld [vmem:[#allocation5 + $0x24] ss:$8 sps:$4 sm:$0xff]   ;;  %v509_v14 = vld [vmem:[#allocation7 + $0x70] sm:$0xff]   ;;  %v85_v37 = vshrl.u32 %v84_v36, 7  ;;  %s617_s12 = smov [#allocation8]  }
  0x2b   :  { %v508_v12 = vld [vmem:[#allocation7 + $0x38] sm:$0xff]   ;;  %452 = vmatprep.subr.bf16.mxu1 %v507_v10  ;;  %v510_v15 = vld [vmem:[#allocation7 + $0x30] sm:$0xff]   ;;  %v500_v17 = vld [vmem:[#allocation5 + $0x20] ss:$8 sps:$4 sm:$0xff]   ;;  %s406_s13 = sshll.u32 %s617_s12, 4  ;;  %s407_s13 = int_to_ptr.vmem [resolvable:$true] %s406_s13 }
  0x2c   :  { %177 = vmatpush1.bf16.msra.mxu0 %v488_v4  ;;  %453 = vmatpush3.bf16.msra.mxu1 %v508_v12  ;;  %v501_v18 = vld [vmem:[#allocation5 + $0x14] ss:$8 sps:$4 sm:$0xff]   ;;  %v512_v19 = vld [vmem:[#allocation7 + $0x28] sm:$0xff]   ;;  %v513_v20 = vld [vmem:[#allocation7 + $0x60] sm:$0xff]   ;;  %v90_v38 = vsub.s32 1, %v85_v37  ;;  %v86_v39 = vsub.s32 0, %v85_v37  ;;  %p588_p2 = scmp.lt.s32.totalorder %s407_s13, %s407_s13 }
  0x2d   :  { %178 = vmatprep.subr.bf16.mxu0 %v489_v5  ;;  %454 = vmatprep.subr.bf16.mxu1 %v509_v14  ;;  %v503_v21 = vld [vmem:[#allocation5 + $0x10] ss:$8 sps:$4 sm:$0xff]   ;;  %v514_v22 = vld [vmem:[#allocation7 + $0x20] sm:$0xff]   ;;  %v519_v32 = vld [vmem:[#allocation7 + $0x48] sm:$0xff]   ;;  %s583_s14 = scalar_lea.vmem %s407_s13, 256 }
  0x2e   :  { %v504_v23 = vld [vmem:[#allocation5 + $0x4] ss:$8 sps:$4 sm:$0xff]   ;;  %v515_v24 = vld [vmem:[#allocation7 + $0x58] sm:$0xff]   ;;  %v506_v25 = vld [vmem:[#allocation5] ss:$8 sps:$4 sm:$0xff]   ;;  %p584_p1 = scmp.ne.s32.totalorder %s407_s13, %s583_s14  ;;  %p589_p3 = scmp.lt.s32.totalorder %s583_s14, %s583_s14 }
  0x2f   :  { %v63_v26 = vld [vmem:[#allocation2] sm:$0xff]  ;;  %v64_v27 = vld [vmem:[#allocation2 + $0x8] sm:$0xff]  ;;  %v520_v33 = vld [vmem:[#allocation7 + $0x8] sm:$0xff]  }
  0x30   :  { %179 = vmatpush1.bf16.msra.mxu0 %v491_v6  ;;  %455 = vmatpush3.bf16.msra.mxu1 %v510_v15  ;;  %v516_v28 = vld [vmem:[#allocation7 + $0x18] sm:$0xff]   ;;  %v65_v29 = vpack.c.bf16 %v64_v27, %v63_v26  ;;  %v517_v30 = vld [vmem:[#allocation7 + $0x50] sm:$0xff]   ;;  %v521_v34 = vld [vmem:[#allocation7 + $0x40] sm:$0xff]   ;;  %p590_p4 = por %p589_p3, %p588_p2 }
  0x31   :  { %180 = vmatprep.subr.bf16.mxu0 %v492_v7  ;;  %456 = vmatprep.subr.bf16.mxu1 %v511_v16  ;;  %v518_v31 = vld [vmem:[#allocation7 + $0x10] sm:$0xff]   ;;  %v522_v35 = vld [vmem:[#allocation7] sm:$0xff]  }
  0x32   :  { %v82_v40 = vld [vmem:[%s677_s2] sm:$0x3]  ;;  %p591_p5 = pnand %p590_p4, %p584_p1 }
  0x33   :  { %v91_v42 = vrot.slane %v82_v40, %v90_v38  ;;  %v87_v43 = vrot.slane %v82_v40, %v86_v39  ;;  %v435_v58 = vld [vmem:[%s679_s4] ss:$0 sm:$0xff] }
  0x34   :  { %181 = vmatpush1.bf16.msra.mxu0 %v494_v8  ;;  %457 = vmatpush3.bf16.msra.mxu1 %v512_v19 }
  0x35   :  { %182 = vmatprep.subr.bf16.mxu0 %v495_v9  ;;  %458 = vmatprep.subr.bf16.mxu1 %v513_v20 }
  0x38   :  { %183 = vmatpush1.bf16.msra.mxu0 %v497_v11  ;;  %459 = vmatpush3.bf16.msra.mxu1 %v514_v22 }
  0x39   :  { %184 = vmatprep.subr.bf16.mxu0 %v498_v13  ;;  %460 = vmatprep.subr.bf16.mxu1 %v515_v24 }
  0x3c   :  { %185 = vmatpush1.bf16.msra.mxu0 %v500_v17  ;;  %461 = vmatpush3.bf16.msra.mxu1 %v516_v28 }
  0x3d   :  { %186 = vmatprep.subr.bf16.mxu0 %v501_v18  ;;  %462 = vmatprep.subr.bf16.mxu1 %v517_v30 }
  0x40   :  { %187 = vmatpush1.bf16.msra.mxu0 %v503_v21  ;;  %463 = vmatpush3.bf16.msra.mxu1 %v518_v31 }
  0x41   :  { %188 = vmatprep.subr.bf16.mxu0 %v504_v23  ;;  %464 = vmatprep.subr.bf16.mxu1 %v519_v32 }
  0x44   :  { %189 = vmatpush1.bf16.msra.mxu0 %v506_v25  ;;  %465 = vmatpush3.bf16.msra.mxu1 %v520_v33 }
  0x45   :  { %466 = vmatprep.subr.bf16.mxu1 %v521_v34 }
  0x47   :  { %207 = vmatmul.mubr.bf16.vlgmr.msra.gmra.mxu0 %v65_v29 }
  0x48   :  { %467 = vmatpush3.bf16.msra.mxu1 %v522_v35 }
 0x107   :  { %v208_v41 = vpop.f32.mrf.mxu0 }
 0x108   :  { %v209_v48 = vadd.f32 %v208_v41, %v87_v43 }
 0x109   :  { %v210_v44 = vpop.f32.mrf.mxu0 }
 0x10a   :  { %v211_v46 = vadd.f32 %v210_v44, %v91_v42  ;;  %v217_v54 = vmax.f32 %v209_v48, 0.0 }
 0x10b   :  { %v212_v45 = vpop.f32.mrf.mxu0 }
 0x10c   :  { %v213_v47 = vadd.f32 %v212_v45, %v87_v43  ;;  %v218_v52 = vmax.f32 %v211_v46, 0.0 }
 0x10d   :  { %v214_v49 = vpop.f32.mrf.mxu0 }
 0x10e   :  { %v215_v50 = vadd.f32 %v214_v49, %v91_v42  ;;  %v219_v51 = vmax.f32 %v213_v47, 0.0 }
 0x110   :  { %v220_v53 = vmax.f32 %v215_v50, 0.0  ;;  %v221_v56 = vpack.c.bf16 %v219_v51, %v217_v54 }
 0x112   :  { %v222_v55 = vpack.c.bf16 %v220_v53, %v218_v52 }
 0x114   :  { %390 = vmatprep.mubr.bf16.mxu1 %v222_v55 }
 0x115   :  { %391 = vmatmul.mubr.bf16.vlgmr.msra.gmra.mxu1 %v221_v56 }
 0x1d5   :  { %v468_v57 = vpop.f32.mrf.mxu1 }
 0x1d7   :  { %v469_v59 = vpop.f32.mrf.mxu1 }
 0x1d8   :  { %v470_v60 = vadd.f32 %v469_v59, %v468_v57 }
 0x1d9   :  { %v471_v61 = vpop.f32.mrf.mxu1 }
 0x1da   :  { %v393_v62 = vadd.f32 %v470_v60, %v435_v58 }
 0x1db   :  { %v472_v63 = vpop.f32.mrf.mxu1 }
 0x1dc   :  { %399 = vst [vmem:[#allocation8] sm:$0xff] %v393_v62  ;;  %v473_v0 = vadd.f32 %v472_v63, %v471_v61 }
 0x1de   :  { %v396_v1 = vadd.f32 %v473_v0, %v435_v58 }
 0x1e0   :  { %400 = vst [vmem:[#allocation8 + $0x8] sm:$0xff] %v396_v1 }
 0x1e1   :  { %594 = shalt.err (!%p591_p5)
}
 0x1e2   :  { %412 = dma.vmem_to_hbm [thread:$0]  %s407_s13, 256, %s680_s5, [#allocation4], %s611_s23, %s611_s23, %s612_s24  }
 0x1e3   :  { %607 = dma.done.wait [#allocation4], 256  }
 0x1e4   :  { %608 = vsyncadd [#allocation4], 4294967040 }
 0x1e5   :  { %416 = vsyncpa [#allocation3], 1 }
 0x1e6   :  { %417 = vsyncpa [#allocation6], 1 }
 0x1e7   :  { %418 = vsyncpa [#allocation4], 1 }

</bundles_post_ra>
